<compile_context>
chip_gen: v5e
topology: v5e:2x2
jax: 0.10.0
libtpu: 0.0.40
codegen_flags: <defaults>
</compile_context>

<pallas_src>
import functools

import jax
import jax.numpy as jnp
from jax.experimental import pallas as pl
from jax.experimental.pallas import tpu as pltpu


def embedding_kernel(x_ref, w1_ref, b1_ref, w2_ref, b2_ref, o_ref, *, c_in):
    # x_ref:  (1, C_in, tn)   f32   input tile, N on lanes
    # w1_ref: (C_out, C_in)   f32   BN1-folded conv1 weight
    # b1_ref: (C_out, 1)      f32   BN1-folded bias
    # w2_ref: (C_out, C_out)  bf16  BN2-folded conv2 weight
    # b2_ref: (C_out, 1)      f32   BN2-folded bias
    # o_ref:  (1, C_out, tn)  f32
    x = x_ref[0]                              # (C_in, tn) f32

    # --- layer 1: tiny-K conv1d(k=1) + ReLU on the VPU (no wasted MXU K-padding) ---
    h = b1_ref[...]                           # (C_out, 1) broadcast over lanes
    for k in range(c_in):                     # static unroll (C_in == 3)
        h = h + w1_ref[:, k:k + 1] * x[k:k + 1, :]
    h = jnp.maximum(h, 0.0)                   # (C_out, tn) f32

    # --- layer 2: 128x128 conv1d(k=1) on the MXU, bf16 operands, f32 accumulate ---
    y = jnp.dot(w2_ref[...], h.astype(jnp.bfloat16),
                preferred_element_type=jnp.float32)
    o_ref[0] = jnp.maximum(y + b2_ref[...], 0.0).astype(o_ref.dtype)


def embedding_forward(x, params, *, tn=512):
    """x: [B, C_in, N] float32  ->  [B, C_out, N] float32 (matches the PyTorch module)."""
    w1s, b1, w2s, b2 = params
    B, C_in, N = x.shape
    C_out = w1s.shape[0]

    # lane-dense tile along N: multiple of 128, capped near N; pad N up to a tile multiple.
    tn = max(128, min(tn, ((N + 127) // 128) * 128))
    n_pad = pl.cdiv(N, tn) * tn
    if n_pad != N:
        x = jnp.pad(x, ((0, 0), (0, 0), (0, n_pad - N)))

    w2_bf16 = w2s.astype(jnp.bfloat16)        # MXU-native operand, halves weight traffic

    grid = (B, n_pad // tn)
    out = pl.pallas_call(
        functools.partial(embedding_kernel, c_in=C_in),
        out_shape=jax.ShapeDtypeStruct((B, C_out, n_pad), jnp.float32),
        grid_spec=pltpu.PrefetchScalarGridSpec(
            num_scalar_prefetch=0,
            grid=grid,
            in_specs=[
                pl.BlockSpec((1, C_in, tn), lambda b, j: (b, 0, j)),   # x tile (channels-first)
                pl.BlockSpec((C_out, C_in), lambda b, j: (0, 0)),      # w1 (BN1 folded)
                pl.BlockSpec((C_out, 1), lambda b, j: (0, 0)),         # b1
                pl.BlockSpec((C_out, C_out), lambda b, j: (0, 0)),     # w2 (BN2 folded, bf16)
                pl.BlockSpec((C_out, 1), lambda b, j: (0, 0)),         # b2
            ],
            out_specs=pl.BlockSpec((1, C_out, tn), lambda b, j: (b, 0, j)),
        ),
        compiler_params=pltpu.CompilerParams(
            dimension_semantics=("parallel", "parallel"),
        ),
    )(x, w1s, b1, w2_bf16, b2)

    if n_pad != N:
        out = out[:, :, :N]
    return out


def make_params(key, in_channels=3, out_channels=128, eps=1e-5):
    """Deterministic synthetic parameters; BatchNorm (eval mode) folded into the weights."""
    ks = jax.random.split(key, 8)
    # PyTorch Conv1d weight is [C_out, C_in, 1] -> keep as [C_out, C_in] (channels-first matmul)
    w1 = jax.random.normal(ks[0], (out_channels, in_channels), jnp.float32) * 0.1
    w2 = jax.random.normal(ks[1], (out_channels, out_channels), jnp.float32) * 0.1
    # BN1
    g1 = 1.0 + 0.1 * jax.random.normal(ks[2], (out_channels,), jnp.float32)
    be1 = 0.1 * jax.random.normal(ks[3], (out_channels,), jnp.float32)
    m1 = 0.1 * jax.random.normal(ks[4], (out_channels,), jnp.float32)
    v1 = jnp.abs(jax.random.normal(ks[5], (out_channels,), jnp.float32)) + 0.5
    # BN2
    g2 = 1.0 + 0.1 * jax.random.normal(ks[6], (out_channels,), jnp.float32)
    be2 = 0.1 * jax.random.normal(ks[7], (out_channels,), jnp.float32)
    m2 = jnp.zeros((out_channels,), jnp.float32)
    v2 = jnp.ones((out_channels,), jnp.float32)

    s1 = g1 / jnp.sqrt(v1 + eps)
    s2 = g2 / jnp.sqrt(v2 + eps)
    # fold BN scale into conv weights (per output channel = per weight row)
    w1s = w1 * s1[:, None]
    w2s = w2 * s2[:, None]
    b1 = (be1 - m1 * s1)[:, None]   # (C_out, 1)
    b2 = (be2 - m2 * s2)[:, None]   # (C_out, 1)
    return (w1s, b1, w2s, b2)


def reference_forward(x, params):
    """Pure-JAX f32 reference of the same math (conv1d k=1 + folded BN + relu, twice)."""
    w1s, b1, w2s, b2 = params
    h = jnp.maximum(jnp.einsum('oc,bcn->bon', w1s, x) + b1[None, :, :], 0.0)
    y = jnp.maximum(jnp.einsum('oc,bcn->bon', w2s, h) + b2[None, :, :], 0.0)
    return y


if __name__ == "__main__":
    key = jax.random.PRNGKey(0)
    kx, kp = jax.random.split(key)

    B, C_in, N = 2, 3, 256          # point cloud: 2 batches, 3 coords, 256 points
    C_out = 128
    x = jax.random.normal(kx, (B, C_in, N), jnp.float32)
    params = make_params(kp, in_channels=C_in, out_channels=C_out)

    out = embedding_forward(x, params)
    out = jax.block_until_ready(out)

    ref = reference_forward(x, params)
    assert out.shape == (B, C_out, N)
    # second matmul runs in bf16 on the MXU -> loosen tolerance vs the f32 reference
    assert jnp.allclose(out, ref, atol=2e-2, rtol=2e-2), float(jnp.max(jnp.abs(out - ref)))

    print("KERNEL_OK")
</pallas_src>

<mosaic_0001>
module attributes {stable_mosaic.version = 11 : i64} {
  func.func @embedding_kernel(%arg0: i32, %arg1: i32, %arg2: memref<1x3x256xf32, #tpu.memory_space<vmem>>, %arg3: memref<128x3xf32, #tpu.memory_space<vmem>>, %arg4: memref<128x1xf32, #tpu.memory_space<vmem>>, %arg5: memref<128x128xbf16, #tpu.memory_space<vmem>>, %arg6: memref<128x1xf32, #tpu.memory_space<vmem>>, %arg7: memref<1x128x256xf32, #tpu.memory_space<vmem>>) attributes {dimension_semantics = [#tpu.dimension_semantics<parallel>, #tpu.dimension_semantics<parallel>], iteration_bounds = array<i64: 2, 1>, scalar_prefetch = 0 : i64, scratch_operands = 0 : i64, tpu.core_type = #tpu.core_type<tc>, window_params = [{transform_indices = @transform_0, window_bounds = array<i64: 1, 3, 256>}, {pipeline_mode = #tpu.pipeline_mode<synchronous>, transform_indices = @transform_1, window_bounds = array<i64: 128, 3>}, {pipeline_mode = #tpu.pipeline_mode<synchronous>, transform_indices = @transform_2, window_bounds = array<i64: 128, 1>}, {pipeline_mode = #tpu.pipeline_mode<synchronous>, transform_indices = @transform_3, window_bounds = array<i64: 128, 128>}, {pipeline_mode = #tpu.pipeline_mode<synchronous>, transform_indices = @transform_4, window_bounds = array<i64: 128, 1>}, {transform_indices = @transform_5, window_bounds = array<i64: 1, 128, 256>}]} {
    %c0 = arith.constant 0 : index
    %c0_0 = arith.constant 0 : index
    %c0_1 = arith.constant 0 : index
    %0 = vector.load %arg2[%c0, %c0_0, %c0_1] : memref<1x3x256xf32, #tpu.memory_space<vmem>>, vector<1x3x256xf32>
    %1 = vector.shape_cast %0 : vector<1x3x256xf32> to vector<3x256xf32>
    %c0_2 = arith.constant 0 : index
    %c0_3 = arith.constant 0 : index
    %2 = vector.load %arg4[%c0_2, %c0_3] : memref<128x1xf32, #tpu.memory_space<vmem>>, vector<128x1xf32>
    %c0_4 = arith.constant 0 : index
    %c0_5 = arith.constant 0 : index
    %3 = vector.load %arg3[%c0_4, %c0_5] : memref<128x3xf32, #tpu.memory_space<vmem>>, vector<128x1xf32>
    %4 = vector.extract_strided_slice %1 {offsets = [0, 0], sizes = [1, 256], strides = [1, 1]} : vector<3x256xf32> to vector<1x256xf32>
    %5 = vector.broadcast %3 : vector<128x1xf32> to vector<128x256xf32>
    %6 = vector.broadcast %4 : vector<1x256xf32> to vector<128x256xf32>
    %7 = arith.mulf %5, %6 : vector<128x256xf32>
    %8 = vector.broadcast %2 : vector<128x1xf32> to vector<128x256xf32>
    %9 = arith.addf %8, %7 : vector<128x256xf32>
    %c0_6 = arith.constant 0 : index
    %c1 = arith.constant 1 : index
    %10 = vector.load %arg3[%c0_6, %c1] : memref<128x3xf32, #tpu.memory_space<vmem>>, vector<128x1xf32>
    %11 = vector.extract_strided_slice %1 {offsets = [1, 0], sizes = [1, 256], strides = [1, 1]} : vector<3x256xf32> to vector<1x256xf32>
    %12 = vector.broadcast %10 : vector<128x1xf32> to vector<128x256xf32>
    %13 = vector.broadcast %11 : vector<1x256xf32> to vector<128x256xf32>
    %14 = arith.mulf %12, %13 : vector<128x256xf32>
    %15 = arith.addf %9, %14 : vector<128x256xf32>
    %c0_7 = arith.constant 0 : index
    %c2 = arith.constant 2 : index
    %16 = vector.load %arg3[%c0_7, %c2] : memref<128x3xf32, #tpu.memory_space<vmem>>, vector<128x1xf32>
    %17 = vector.extract_strided_slice %1 {offsets = [2, 0], sizes = [1, 256], strides = [1, 1]} : vector<3x256xf32> to vector<1x256xf32>
    %18 = vector.broadcast %16 : vector<128x1xf32> to vector<128x256xf32>
    %19 = vector.broadcast %17 : vector<1x256xf32> to vector<128x256xf32>
    %20 = arith.mulf %18, %19 : vector<128x256xf32>
    %21 = arith.addf %15, %20 : vector<128x256xf32>
    %cst = arith.constant 0.000000e+00 : f32
    %22 = vector.broadcast %cst : f32 to vector<128x256xf32>
    %23 = arith.maximumf %21, %22 : vector<128x256xf32>
    %c0_8 = arith.constant 0 : index
    %c0_9 = arith.constant 0 : index
    %24 = vector.load %arg5[%c0_8, %c0_9] : memref<128x128xbf16, #tpu.memory_space<vmem>>, vector<128x128xbf16>
    %25 = arith.truncf %23 : vector<128x256xf32> to vector<128x256xbf16>
    %cst_10 = arith.constant dense<0.000000e+00> : vector<128x256xf32>
    %26 = tpu.matmul %24, %25, %cst_10 {dimension_numbers = #tpu.dot_dimension_numbers<[1], [0], [0], [1], [0, 0, 1, 1], [], []>} : vector<128x128xbf16>, vector<128x256xbf16>, vector<128x256xf32> -> vector<128x256xf32>
    %c0_11 = arith.constant 0 : index
    %c0_12 = arith.constant 0 : index
    %27 = vector.load %arg6[%c0_11, %c0_12] : memref<128x1xf32, #tpu.memory_space<vmem>>, vector<128x1xf32>
    %28 = vector.broadcast %27 : vector<128x1xf32> to vector<128x256xf32>
    %29 = arith.addf %26, %28 : vector<128x256xf32>
    %cst_13 = arith.constant 0.000000e+00 : f32
    %30 = vector.broadcast %cst_13 : f32 to vector<128x256xf32>
    %31 = arith.maximumf %29, %30 : vector<128x256xf32>
    %c0_14 = arith.constant 0 : index
    %c0_15 = arith.constant 0 : index
    %c0_16 = arith.constant 0 : index
    %32 = vector.load %arg7[%c0_14, %c0_15, %c0_16] : memref<1x128x256xf32, #tpu.memory_space<vmem>>, vector<1x128x256xf32>
    %33 = vector.shape_cast %32 : vector<1x128x256xf32> to vector<128x256xf32>
    %34 = vector.shape_cast %31 : vector<128x256xf32> to vector<1x128x256xf32>
    tpu.vector_store %arg7[%c0_14, %c0_15, %c0_16], %34 {strides = array<i32>} : memref<1x128x256xf32, #tpu.memory_space<vmem>>, vector<1x128x256xf32>,
    return
  }
  func.func @transform_0(%arg0: i32, %arg1: i32) -> (i32, i32, i32) {
    %c0_i32 = arith.constant 0 : i32
    %c0_i32_0 = arith.constant 0 : i32
    return %arg0, %c0_i32, %arg1 : i32, i32, i32
  }
  func.func @transform_1(%arg0: i32, %arg1: i32) -> (i32, i32) {
    %c0_i32 = arith.constant 0 : i32
    %c0_i32_0 = arith.constant 0 : i32
    %c0_i32_1 = arith.constant 0 : i32
    return %c0_i32, %c0_i32_0 : i32, i32
  }
  func.func @transform_2(%arg0: i32, %arg1: i32) -> (i32, i32) {
    %c0_i32 = arith.constant 0 : i32
    %c0_i32_0 = arith.constant 0 : i32
    %c0_i32_1 = arith.constant 0 : i32
    return %c0_i32, %c0_i32_0 : i32, i32
  }
  func.func @transform_3(%arg0: i32, %arg1: i32) -> (i32, i32) {
    %c0_i32 = arith.constant 0 : i32
    %c0_i32_0 = arith.constant 0 : i32
    %c0_i32_1 = arith.constant 0 : i32
    return %c0_i32, %c0_i32_0 : i32, i32
  }
  func.func @transform_4(%arg0: i32, %arg1: i32) -> (i32, i32) {
    %c0_i32 = arith.constant 0 : i32
    %c0_i32_0 = arith.constant 0 : i32
    %c0_i32_1 = arith.constant 0 : i32
    return %c0_i32, %c0_i32_0 : i32, i32
  }
  func.func @transform_5(%arg0: i32, %arg1: i32) -> (i32, i32, i32) {
    %c0_i32 = arith.constant 0 : i32
    %c0_i32_0 = arith.constant 0 : i32
    return %arg0, %c0_i32, %arg1 : i32, i32, i32
  }
}

</mosaic_0001>

<bundles_post_ra>
// kernel: tpu_custom_call.1
= control target key start
LH: loop header
LB: loop body
LE: loop exit
PB: predicated region body
PF: predicated region fallthrough
CT: control target
= control target key end

     0   :  { %10 = vsyncpa [#allocation3], 0  ;;  %s2173_s0 = inlined_call_operand.vmem [shape: f32[2,3,256], index: 0, kind: input, shape index: {}]   ;;  %s2174_s1 = inlined_call_operand.vmem [shape: f32[128,3], index: 1, kind: input, shape index: {}]   ;;  %s2175_s2 = inlined_call_operand.vmem [shape: f32[128,1], index: 2, kind: input, shape index: {}]   ;;  %s2176_s3 = inlined_call_operand.vmem [shape: bf16[128,128], index: 3, kind: input, shape index: {}]   ;;  %s2177_s4 = inlined_call_operand.vmem [shape: f32[128,1], index: 4, kind: input, shape index: {}]   ;;  %s2178_s5 = inlined_call_operand.hbm [shape: f32[2,128,256], index: 5, kind: output, shape index: {}]  }
   0x1   :  { %12 = vsyncpa [#allocation3 + $0x1], 0  ;;  %s1521_s18 = smov 0   ;;  %s1523_s19 = smov 0  }
   0x2   :  { %s1525_s20 = smov 0   ;;  %s1527_s21 = smov 0  }
   0x3   :  { %s1529_s22 = smov 0   ;;  %s1531_s23 = smov 0  }
   0x4 LB: > { %s1253_s24 = sadd.s32 4294967295, %s1484_s23   ;;  %s1254_s25 = sadd.s32 4294967294, %s1484_s23   ;;  %s1484_s23 = sphi %s1531_s23, %s18_s23   ;;  %s1480_s22 = sphi %s1529_s22, %s2185_s22   ;;  %s1476_s21 = sphi %s1527_s21, %s2184_s21   ;;  %s1472_s20 = sphi %s1525_s20, %s2183_s20   ;;  %s1468_s19 = sphi %s1523_s19, %s2182_s19   ;;  %s1464_s18 = sphi %s1521_s18, %s2181_s18  }
   0x5   : > { %s30_s26 = sadd.s32 1, %s1480_s22  ;;  %s151_s27 = sadd.s32 1, %s1472_s20 }
   0x6   : > { %p32_p0 = scmp.ge.s32.totalorder %s30_s26, 2  ;;  %p161_p1 = scmp.ne.s32.totalorder %s1472_s20, %s1468_s19 }
   0x7   : > { %p162_p2 = scmp.eq.s32.totalorder %s1253_s24, 1  ;;  %p167_p3 = scmp.ne.s32.totalorder %s1468_s19, %s1464_s18 }
   0x8   : > { %s2187_s26 = smov (%p32_p0, %s30_s26), 0  ;;  %p168_p5 = scmp.eq.s32.totalorder %s1254_s25, 1 }
   0x9   : > { %p1561_p4 = por %p162_p2, %p161_p1  ;;  %s146_s29 = ssub.s32 %s1480_s22, %s2187_s26 }
   0xa   : > { %p1257_p6 = scmp.ge.s32.totalorder %s1484_s23, 1  ;;  %p149_p7 = scmp.eq.s32.totalorder %s146_s29, 0 }
   0xb   : > { %p1568_p8 = por %p168_p5, %p167_p3  ;;  %p211_p9 = scmp.lt.s32.totalorder %s1484_s23, 3 }
   0xc   : > { %s1574_s6 = scalar_select %p149_p7, %s1472_s20, %s151_s27  }
   0xd   : > { %p212_p10 = pnand %p1257_p6, %p211_p9 }
   0xe   : > { %p244_p11 = scmp.lt.s32.totalorder (!%p212_p10), %s1476_s21, 1  ;;  %s240_s25 = sand.u32 (!%p212_p10), 1, %s1468_s19  }
   0xf   : > { %215 = sbr.rel (%p212_p10) target bundleno = 529 (0x211), region = 40  ;;  %s1258_s27 = sshll.u32 (!%p212_p10), %s240_s25, 8 }
  0x10   : > { %s2090_s29 = scalar_lea.vmem (!%p212_p10), [#allocation2], %s1258_s27  ;;  %s1307_s7 = sshll.u32 (!%p212_p10), %s1476_s21, 8 }
  0x11   : > { %s1170_s10 = scalar_lea.hbm (!%p212_p10), %s2178_s5, %s1307_s7  ;;  %s1426_s17 = scalar_lea.hbm (!%p212_p10), %s2178_s5, 512 }
  0x14   : > { %v1579_v0 = vld [vmem:[%s2174_s1 + $0x20] sm:$0xff]  ;;  %v1584_v1 = vld [vmem:[%s2174_s1 + $0x10] sm:$0xff]  ;;  %v1486_v3 = vmov 0   ;;  %v1600_v4 = vld [vmem:[%s2174_s1 + $0x28] sm:$0xff]  ;;  %v1487_v33 = vmov 1   ;;  %v1488_v34 = vmov 2  }
  0x15   : > { %v1589_v2 = vld [vmem:[%s2174_s1] sm:$0xff]  ;;  %1386 = vset.pattern.permute.xlu2 %v1486_v3  ;;  %1385 = vset.pattern.permute.xlu1 %v1486_v3  ;;  %v1605_v5 = vld [vmem:[%s2174_s1 + $0x18] sm:$0xff]  ;;  %v1610_v6 = vld [vmem:[%s2174_s1 + $0x8] sm:$0xff]  ;;  %s245_s11 = scalar_select %p244_p11, %s1476_s21, 1 }
  0x16   : > { %1384 = vset.pattern.permute.xlu0 %v1486_v3  ;;  %309 = vperm.xlu2 %1386, %v1579_v0   ;;  %v1618_v7 = vld [vmem:[%s2174_s1 + $0x40] sm:$0xff]  ;;  %v1623_v8 = vld [vmem:[%s2174_s1 + $0x38] sm:$0xff]  ;;  %v1628_v9 = vld [vmem:[%s2174_s1 + $0x30] sm:$0xff]  ;;  %s1171_s21 = sshll.u32 %s2090_s29, 4  ;;  %s1172_s21 = int_to_ptr.vmem [resolvable:$true] %s1171_s21 }
  0x17   : > { %299 = vperm.xlu1 %1385, %v1584_v1   ;;  %289 = vperm.xlu0 %1384, %v1589_v2   ;;  %v1636_v10 = vld [vmem:[%s2174_s1 + $0x58] sm:$0xff]  ;;  %v1641_v11 = vld [vmem:[%s2174_s1 + $0x50] sm:$0xff]  ;;  %v1646_v12 = vld [vmem:[%s2174_s1 + $0x48] sm:$0xff]  ;;  %s1298_s12 = sshll.u32 %s245_s11, 3  ;;  %s1173_s11 = sshll.u32 %s1170_s10, 4  ;;  %s1174_s11 = int_to_ptr.hbm [resolvable:$true] %s1173_s11 }
  0x18   : > { %v285_v13 = vld [vmem:[%s2174_s1 + $0x70] sm:$0xff]  ;;  %v1657_v14 = vld [vmem:[%s2174_s1 + $0x68] sm:$0xff]  ;;  %v1662_v15 = vld [vmem:[%s2174_s1 + $0x60] sm:$0xff]  ;;  %s251_s15 = scalar_lea.vmem %s2173_s0, %s1298_s12  ;;  %s1157_s12 = scalar_lea.sflag [#allocation3], %s240_s25 }
  0x19   : > { %v256_v16 = vld [vmem:[%s2175_s2 + $0x8] sm:$0xff]  ;;  %v286_v17 = vld [vmem:[%s2174_s1 + $0x78] sm:$0xff]  ;;  %v255_v18 = vld [vmem:[%s2175_s2] sm:$0xff]  ;;  %s1420_s13 = sshra.s32 %s1174_s11, 4  ;;  %s1421_s13 = int_to_ptr.hbm [resolvable:$true] %s1420_s13 }
  0x1a   : > { %v259_v19 = vld [vmem:[%s2175_s2 + $0x20] sm:$0xff]  ;;  %v257_v20 = vld [vmem:[%s2175_s2 + $0x10] sm:$0xff]  ;;  %v258_v21 = vld [vmem:[%s2175_s2 + $0x18] sm:$0xff]  ;;  %s1422_s14 = scalar_lea.hbm %s1421_s13, 256  ;;  %p1427_p1 = scmp.lt.s32.totalorder %s1421_s13, %s2178_s5 }
  0x1b   : > { %v262_v22 = vld [vmem:[%s2175_s2 + $0x38] sm:$0xff]  ;;  %v260_v23 = vld [vmem:[%s2175_s2 + $0x28] sm:$0xff]  ;;  %v261_v24 = vld [vmem:[%s2175_s2 + $0x30] sm:$0xff]  ;;  %p1423_p12 = scmp.ne.s32.totalorder %s1421_s13, %s1422_s14  ;;  %p1428_p2 = scmp.lt.s32.totalorder %s1426_s17, %s1422_s14 }
  0x1c   : > { %v265_v25 = vld [vmem:[%s2175_s2 + $0x50] sm:$0xff]  ;;  %v263_v26 = vld [vmem:[%s2175_s2 + $0x40] sm:$0xff]  ;;  %v264_v27 = vld [vmem:[%s2175_s2 + $0x48] sm:$0xff] }
  0x1d   : > { %v268_v28 = vld [vmem:[%s2175_s2 + $0x68] sm:$0xff]  ;;  %v266_v29 = vld [vmem:[%s2175_s2 + $0x58] sm:$0xff]  ;;  %v267_v30 = vld [vmem:[%s2175_s2 + $0x60] sm:$0xff]  ;;  %p1424_p13 = pnand %p1423_p12, %p1561_p4  ;;  %p1429_p3 = por %p1428_p2, %p1427_p1 }
  0x1e   : > { %314 = vperm.xlu2 %1386, %v1600_v4   ;;  %v269_v31 = vld [vmem:[%s2175_s2 + $0x70] sm:$0xff]  ;;  %v270_v32 = vld [vmem:[%s2175_s2 + $0x78] sm:$0xff]  ;;  %v1746_v41 = vld [vmem:[%s251_s15] sm:$0x77] }
  0x1f   : > { %304 = vperm.xlu1 %1385, %v1605_v5   ;;  %294 = vperm.xlu0 %1384, %v1610_v6   ;;  %v368_v42 = vperm.slane %v1746_v41, 0  ;;  %v369_v43 = vperm.slane %v1746_v41, 4  ;;  %p1425_p0 = pneg %p1424_p13 }
  0x21   : > { %v1755_v47 = vperm.slane %v368_v42, 0  ;;  %v1757_v48 = vperm.slane %v369_v43, 0  ;;  %v583_v42 = vperm.slane %v1746_v41, 5  ;;  %p1430_p5 = pnand %p1429_p3, %p1425_p0 }
  0x23   : > { %v1832_v43 = vperm.slane %v583_v42, 1 }
  0x26   : > { %329 = vperm.xlu2 %1386, %v1618_v7  }
  0x27   : > { %324 = vperm.xlu1 %1385, %v1623_v8   ;;  %319 = vperm.xlu0 %1384, %v1628_v9  }
  0x2e   : > { %344 = vperm.xlu2 %1386, %v1636_v10  }
  0x2f   : > { %339 = vperm.xlu1 %1385, %v1641_v11   ;;  %334 = vperm.xlu0 %1384, %v1646_v12  }
  0x36   : > { %359 = vperm.xlu2 %1386, %v285_v13  }
  0x37   : > { %354 = vperm.xlu1 %1385, %v1657_v14   ;;  %349 = vperm.xlu0 %1384, %v1662_v15  }
  0x3e   : > { %413 = vperm.xlu2 %1386, %v256_v16  }
  0x3f   : > { %364 = vperm.xlu0 %1384, %v286_v17   ;;  %408 = vperm.xlu1 %1385, %v255_v18  }
  0x46   : > { %428 = vperm.xlu2 %1386, %v259_v19  }
  0x47   : > { %418 = vperm.xlu0 %1384, %v257_v20   ;;  %423 = vperm.xlu1 %1385, %v258_v21  }
  0x4e   : > { %443 = vperm.xlu2 %1386, %v262_v22  }
  0x4f   : > { %433 = vperm.xlu0 %1384, %v260_v23   ;;  %438 = vperm.xlu1 %1385, %v261_v24  }
  0x56   : > { %458 = vperm.xlu2 %1386, %v265_v25  }
  0x57   : > { %448 = vperm.xlu0 %1384, %v263_v26   ;;  %453 = vperm.xlu1 %1385, %v264_v27  }
  0x5e   : > { %473 = vperm.xlu2 %1386, %v268_v28  }
  0x5f   : > { %463 = vperm.xlu0 %1384, %v266_v29   ;;  %468 = vperm.xlu1 %1385, %v267_v30  }
  0x66   : > { %1387 = vset.pattern.permute.xlu2 %v1487_v33 }
  0x67   : > { %478 = vperm.xlu0 %1384, %v269_v31   ;;  %483 = vperm.xlu1 %1385, %v270_v32  }
  0x68   : > { %519 = vperm.xlu2 %1387, %v1589_v2  }
  0x6f   : > { %1390 = vset.pattern.permute.xlu0 %v1488_v34  ;;  %1388 = vset.pattern.permute.xlu1 %v1487_v33 }
  0x70   : > { %713 = vperm.xlu0 %1390, %v286_v17   ;;  %575 = vperm.xlu2 %1387, %v285_v13   ;;  %v310_v35 = vpop.permute.xlu2 %309 }
  0x71   : > { %527 = vperm.xlu1 %1388, %v1584_v1   ;;  %v382_v56 = vmul.f32 %v1755_v47, %v310_v35  ;;  %v383_v57 = vmul.f32 %v1757_v48, %v310_v35 }
  0x78   : > { %681 = vperm.xlu0 %1390, %v1623_v8   ;;  %1389 = vset.pattern.permute.xlu2 %v1488_v34  ;;  %v1724_v36 = vpop.permute.xlu2 %314 }
  0x79   : > { %579 = vperm.xlu1 %1388, %v286_v17   ;;  %709 = vperm.xlu2 %1389, %v285_v13  }
  0x80   : > { %1399 = vset.pattern.permute.xlu0 %v1487_v33  ;;  %v1728_v37 = vpop.permute.xlu2 %329 }
  0x81   : > { %567 = vperm.xlu1 %1388, %v1662_v15   ;;  %523 = vperm.xlu0 %1399, %v1610_v6  }
  0x82   : > { %1391 = vset.pattern.permute.xlu2 %v1487_v33 }
  0x83   : > { %571 = vperm.xlu2 %1391, %v1657_v14  }
  0x88   : > { %v1735_v38 = vpop.permute.xlu2 %344 }
  0x89   : > { %1392 = vset.pattern.permute.xlu1 %v1488_v34  ;;  %v1741_v39 = vpop.permute.xlu1 %299  ;;  %v290_v40 = vpop.permute.xlu0 %289  ;;  %559 = vperm.xlu0 %1399, %v1641_v11  }
  0x8a   : > { %701 = vperm.xlu1 %1392, %v1662_v15   ;;  %v379_v25 = vmul.f32 %v1757_v48, %v1741_v39 }
  0x8b   : > { %1393 = vset.pattern.permute.xlu2 %v1488_v34 }
  0x8c   : > { %705 = vperm.xlu2 %1393, %v1657_v14  }
  0x90   : > { %v1751_v44 = vpop.permute.xlu2 %359 }
  0x91   : > { %v305_v45 = vpop.permute.xlu1 %304  ;;  %v295_v46 = vpop.permute.xlu0 %294  ;;  %555 = vperm.xlu0 %1399, %v1646_v12  }
  0x92   : > { %1394 = vset.pattern.permute.xlu1 %v1487_v33  ;;  %v376_v49 = vmul.f32 %v1755_v47, %v295_v46  ;;  %v377_v50 = vmul.f32 %v1757_v48, %v295_v46  ;;  %v380_v26 = vmul.f32 %v1755_v47, %v305_v45  ;;  %v381_v27 = vmul.f32 %v1757_v48, %v305_v45 }
  0x93   : > { %563 = vperm.xlu1 %1394, %v1636_v10   ;;  %v384_v45 = vmul.f32 %v1755_v47, %v1724_v36  ;;  %v385_v46 = vmul.f32 %v1757_v48, %v1724_v36 }
  0x94   : > { %693 = vperm.xlu2 %1393, %v1641_v11  }
  0x98   : > { %v414_v51 = vpop.permute.xlu2 %413 }
  0x99   : > { %v325_v52 = vpop.permute.xlu1 %324  ;;  %v1763_v53 = vpop.permute.xlu0 %319  ;;  %543 = vperm.xlu0 %1399, %v1628_v9   ;;  %v1766_v54 = vadd.f32 %v414_v51, %v376_v49  ;;  %v1768_v55 = vadd.f32 %v414_v51, %v377_v50 }
  0x9a   : > { %v388_v63 = vmul.f32 %v1755_v47, %v325_v52  ;;  %v386_v49 = vmul.f32 %v1755_v47, %v1763_v53  ;;  %v387_v50 = vmul.f32 %v1757_v48, %v1763_v53 }
  0x9b   : > { %1395 = vset.pattern.permute.xlu1 %v1488_v34 }
  0x9c   : > { %1396 = vset.pattern.permute.xlu2 %v1487_v33  ;;  %697 = vperm.xlu1 %1395, %v1636_v10   ;;  %v389_v10 = vmul.f32 %v1757_v48, %v325_v52 }
  0x9d   : > { %551 = vperm.xlu2 %1396, %v1618_v7  }
  0xa0   : > { %v429_v58 = vpop.permute.xlu2 %428 }
  0xa1   : > { %v340_v59 = vpop.permute.xlu1 %339  ;;  %v1776_v60 = vpop.permute.xlu0 %334  ;;  %531 = vperm.xlu0 %1399, %v1605_v5   ;;  %v1779_v61 = vadd.f32 %v429_v58, %v382_v56  ;;  %v1781_v62 = vadd.f32 %v429_v58, %v383_v57 }
  0xa2   : > { %v394_v17 = vmul.f32 %v1755_v47, %v340_v59  ;;  %v395_v18 = vmul.f32 %v1757_v48, %v340_v59 }
  0xa4   : > { %685 = vperm.xlu1 %1395, %v1618_v7   ;;  %v374_v7 = vmul.f32 %v1755_v47, %v290_v40 }
  0xa5   : > { %1397 = vset.pattern.permute.xlu2 %v1488_v34 }
  0xa6   : > { %689 = vperm.xlu2 %1397, %v1646_v12   ;;  %v375_v12 = vmul.f32 %v1757_v48, %v290_v40  ;;  %v582_v40 = vperm.slane %v1746_v41, 1 }
  0xa8   : > { %v444_v11 = vpop.permute.xlu2 %443 }
  0xa9   : > { %v1788_v13 = vpop.permute.xlu1 %354  ;;  %v1790_v14 = vpop.permute.xlu0 %349  ;;  %v1792_v15 = vadd.f32 %v444_v11, %v388_v63  ;;  %v1794_v16 = vadd.f32 %v444_v11, %v389_v10  ;;  %1403 = vset.pattern.permute.xlu0 %v1486_v3  ;;  %v393_v10 = vmul.f32 %v1757_v48, %v1776_v60 }
  0xac   : > { %1398 = vset.pattern.permute.xlu1 %v1487_v33 }
  0xad   : > { %547 = vperm.xlu1 %1398, %v1623_v8  }
  0xae   : > { %677 = vperm.xlu2 %1397, %v1628_v9   ;;  %v378_v9 = vmul.f32 %v1755_v47, %v1741_v39  ;;  %v1830_v39 = vperm.slane %v582_v40, 1 }
  0xb0   : > { %v459_v19 = vpop.permute.xlu2 %458 }
  0xb1   : > { %v1804_v20 = vpop.permute.xlu0 %364  ;;  %v1806_v21 = vadd.f32 %v459_v19, %v394_v17  ;;  %v1808_v22 = vadd.f32 %v459_v19, %v395_v18  ;;  %v409_v23 = vpop.permute.xlu1 %408 }
  0xb2   : > { %v486_v24 = vadd.f32 %v409_v23, %v374_v7  ;;  %v487_v8 = vadd.f32 %v409_v23, %v375_v12 }
  0xb5   : > { %535 = vperm.xlu1 %1398, %v1579_v0  }
  0xb6   : > { %1400 = vset.pattern.permute.xlu2 %v1487_v33 }
  0xb7   : > { %539 = vperm.xlu2 %1400, %v1600_v4  }
  0xb8   : > { %v1819_v28 = vpop.permute.xlu2 %473 }
  0xb9   : > { %v419_v29 = vpop.permute.xlu0 %418  ;;  %v424_v30 = vpop.permute.xlu1 %423 }
  0xba   : > { %v490_v31 = vadd.f32 %v419_v29, %v378_v9  ;;  %v491_v32 = vadd.f32 %v419_v29, %v379_v25  ;;  %v1821_v35 = vadd.f32 %v424_v30, %v380_v26  ;;  %v1823_v33 = vadd.f32 %v424_v30, %v381_v27 }
  0xbb   : > { %v717_v9 = vperm.slane %v1746_v41, 6  ;;  %v402_v27 = vmul.f32 %v1755_v47, %v1751_v44  ;;  %v403_v29 = vmul.f32 %v1757_v48, %v1751_v44  ;;  %v405_v44 = vmul.f32 %v1757_v48, %v1804_v20 }
  0xbd   : > { %1401 = vset.pattern.permute.xlu1 %v1488_v34  ;;  %v1887_v30 = vperm.slane %v717_v9, 2 }
  0xbe   : > { %669 = vperm.xlu1 %1401, %v1579_v0  }
  0xbf   : > { %1402 = vset.pattern.permute.xlu2 %v1488_v34 }
  0xc0   : > { %673 = vperm.xlu2 %1402, %v1600_v4   ;;  %v392_v4 = vmul.f32 %v1755_v47, %v1776_v60 }
  0xc1   : > { %v434_v0 = vpop.permute.xlu0 %433  ;;  %v439_v34 = vpop.permute.xlu1 %438 }
  0xc2   : > { %v1843_v51 = vadd.f32 %v434_v0, %v384_v45  ;;  %v1845_v52 = vadd.f32 %v434_v0, %v385_v46  ;;  %v1847_v56 = vadd.f32 %v439_v34, %v386_v49  ;;  %v1849_v57 = vadd.f32 %v439_v34, %v387_v50  ;;  %v520_v58 = vpop.permute.xlu2 %519 }
  0xc3   : > { %v588_v36 = vmul.f32 %v1830_v39, %v520_v58  ;;  %v589_v59 = vmul.f32 %v1832_v43, %v520_v58  ;;  %v404_v50 = vmul.f32 %v1755_v47, %v1804_v20 }
  0xc5   : > { %v1853_v63 = vadd.f32 %v588_v36, %v486_v24  ;;  %v1855_v53 = vadd.f32 %v589_v59, %v487_v8  ;;  %v716_v8 = vperm.slane %v1746_v41, 2 }
  0xc6   : > { %661 = vperm.xlu1 %1401, %v1584_v1  }
  0xc8   : > { %665 = vperm.xlu2 %1402, %v1605_v5  }
  0xc9   : > { %v1863_v11 = vpop.permute.xlu0 %448  ;;  %v454_v7 = vpop.permute.xlu1 %453 }
  0xca   : > { %v1865_v12 = vadd.f32 %v454_v7, %v392_v4  ;;  %v1867_v17 = vadd.f32 %v454_v7, %v393_v10  ;;  %v576_v18 = vpop.permute.xlu2 %575 }
  0xcb   : > { %v616_v41 = vmul.f32 %v1830_v39, %v576_v18  ;;  %v617_v45 = vmul.f32 %v1832_v43, %v576_v18 }
  0xce   : > { %653 = vperm.xlu1 %1401, %v1589_v2  }
  0xd0   : > { %657 = vperm.xlu2 %1402, %v1610_v6  }
  0xd1   : > { %v1871_v1 = vpop.permute.xlu0 %463  ;;  %v1873_v19 = vpop.permute.xlu1 %468 }
  0xd3   : > { %v710_v60 = vpop.permute.xlu2 %709 }
  0xd4   : > { %v751_v34 = vmul.f32 %v1887_v30, %v710_v60 }
  0xd6   : > { %1404 = vset.pattern.permute.xlu1 %v1486_v3 }
  0xd8   : > { %1405 = vset.pattern.permute.xlu2 %v1486_v3  ;;  %v1885_v3 = vperm.slane %v716_v8, 2 }
  0xd9   : > { %v484_v5 = vpop.permute.xlu1 %483  ;;  %v479_v23 = vpop.permute.xlu0 %478 }
  0xda   : > { %v514_v46 = vadd.f32 %v479_v23, %v402_v27  ;;  %v515_v49 = vadd.f32 %v479_v23, %v403_v29  ;;  %v750_v0 = vmul.f32 %v1885_v3, %v710_v60  ;;  %v517_v36 = vadd.f32 %v484_v5, %v405_v44 }
  0xdb   : > { %v401_v44 = vmul.f32 %v1757_v48, %v1788_v13 }
  0xdc   : > { %v649_v58 = vadd.f32 %v617_v45, %v515_v49 }
  0xdd   : > { %v572_v24 = vpop.permute.xlu2 %571 }
  0xde   : > { %v783_v60 = vadd.f32 %v751_v34, %v649_v58  ;;  %v513_v58 = vadd.f32 %v1819_v28, %v401_v44 }
  0xe0   : > { %v815_v45 = vmax.f32 %v783_v60, 0.0 }
  0xe2   : > { %v714_v2 = vpop.permute.xlu0 %713 }
  0xe3   : > { %v528_v25 = vpop.permute.xlu1 %527  ;;  %v752_v10 = vmul.f32 %v1885_v3, %v714_v2  ;;  %v753_v7 = vmul.f32 %v1887_v30, %v714_v2  ;;  %v400_v2 = vmul.f32 %v1755_v47, %v1788_v13  ;;  %v398_v13 = vmul.f32 %v1755_v47, %v1790_v14 }
  0xe4   : > { %v592_v6 = vmul.f32 %v1830_v39, %v528_v25  ;;  %v593_v26 = vmul.f32 %v1832_v43, %v528_v25 }
  0xe5   : > { %v512_v34 = vadd.f32 %v1819_v28, %v400_v2  ;;  %v510_v28 = vadd.f32 %v1873_v19, %v398_v13  ;;  %v396_v13 = vmul.f32 %v1755_v47, %v1735_v38 }
  0xe6   : > { %v1889_v40 = vadd.f32 %v592_v6, %v490_v31  ;;  %v1891_v42 = vadd.f32 %v593_v26, %v491_v32  ;;  %v648_v31 = vadd.f32 %v616_v41, %v514_v46  ;;  %v516_v32 = vadd.f32 %v484_v5, %v404_v50  ;;  %v706_v59 = vpop.permute.xlu2 %705 }
  0xe8   : > { %v782_v25 = vadd.f32 %v750_v0, %v648_v31  ;;  %v615_v0 = vmul.f32 %v1832_v43, %v572_v24 }
  0xea   : > { %v1905_v8 = vpop.permute.xlu0 %681  ;;  %v814_v41 = vmax.f32 %v782_v25, 0.0 }
  0xeb   : > { %v580_v4 = vpop.permute.xlu1 %579 }
  0xec   : > { %v618_v18 = vmul.f32 %v1830_v39, %v580_v4  ;;  %v619_v23 = vmul.f32 %v1832_v43, %v580_v4  ;;  %v749_v4 = vmul.f32 %v1887_v30, %v706_v59 }
  0xee   : > { %v650_v20 = vadd.f32 %v618_v18, %v516_v32  ;;  %v651_v9 = vadd.f32 %v619_v23, %v517_v36  ;;  %v694_v46 = vpop.permute.xlu2 %693  ;;  %v614_v32 = vmul.f32 %v1830_v39, %v572_v24  ;;  %v748_v36 = vmul.f32 %v1885_v3, %v706_v59 }
  0xef   : > { %v399_v24 = vmul.f32 %v1757_v48, %v1790_v14  ;;  %v647_v23 = vadd.f32 %v615_v0, %v513_v58 }
  0xf0   : > { %v784_v6 = vadd.f32 %v752_v10, %v650_v20  ;;  %v785_v26 = vadd.f32 %v753_v7, %v651_v9  ;;  %v646_v18 = vadd.f32 %v614_v32, %v512_v34 }
  0xf1   : > { %v511_v20 = vadd.f32 %v1873_v19, %v399_v24  ;;  %v781_v59 = vadd.f32 %v749_v4, %v647_v23  ;;  %v397_v24 = vmul.f32 %v1757_v48, %v1735_v38  ;;  %v742_v23 = vmul.f32 %v1885_v3, %v694_v46 }
  0xf2   : > { %v816_v27 = vmax.f32 %v784_v6, 0.0  ;;  %v817_v5 = vmax.f32 %v785_v26, 0.0  ;;  %v780_v9 = vadd.f32 %v748_v36, %v646_v18 }
  0xf3   : > { %v568_v29 = vpop.permute.xlu1 %567  ;;  %v1914_v31 = vpop.permute.xlu0 %523 }
  0xf4   : > { %v848_v49 = vpack.c.bf16 %v816_v27, %v814_v41  ;;  %v849_v50 = vpack.c.bf16 %v817_v5, %v815_v45  ;;  %v612_v10 = vmul.f32 %v1830_v39, %v568_v29  ;;  %v613_v7 = vmul.f32 %v1832_v43, %v568_v29 }
  0xf5   : > { %v812_v2 = vmax.f32 %v780_v9, 0.0 }
  0xf6   : > { %994 = vmatpush.bf16.msra.mxu0 %v848_v49  ;;  %1308 = vmatpush.bf16.msra.mxu2 %v848_v49  ;;  %v644_v60 = vadd.f32 %v612_v10, %v510_v28  ;;  %v645_v6 = vadd.f32 %v613_v7, %v511_v20  ;;  %v743_v28 = vmul.f32 %v1887_v30, %v694_v46 }
  0xf7   : > { %1043 = vmatpush.bf16.msra.mxu1 %v849_v50  ;;  %1316 = vmatpush.bf16.msra.mxu3 %v849_v50  ;;  %v552_v14 = vpop.permute.xlu2 %551  ;;  %v813_v50 = vmax.f32 %v781_v59, 0.0  ;;  %v508_v20 = vadd.f32 %v1871_v1, %v396_v13  ;;  %v390_v46 = vmul.f32 %v1755_v47, %v1728_v37 }
  0xfb   : > { %v560_v45 = vpop.permute.xlu0 %559 }
  0xfc   : > { %v702_v25 = vpop.permute.xlu1 %701  ;;  %v608_v0 = vmul.f32 %v1830_v39, %v560_v45  ;;  %v609_v34 = vmul.f32 %v1832_v43, %v560_v45 }
  0xfd   : > { %v746_v26 = vmul.f32 %v1885_v3, %v702_v25  ;;  %v747_v27 = vmul.f32 %v1887_v30, %v702_v25 }
  0xfe   : > { %v640_v36 = vadd.f32 %v608_v0, %v1806_v21  ;;  %v641_v4 = vadd.f32 %v609_v34, %v1808_v22  ;;  %v509_v21 = vadd.f32 %v1871_v1, %v397_v24  ;;  %v604_v1 = vmul.f32 %v1830_v39, %v552_v14 }
  0xff   : > { %v778_v5 = vadd.f32 %v746_v26, %v644_v60  ;;  %v779_v41 = vadd.f32 %v747_v27, %v645_v6 }
 0x100   : > { %v690_v58 = vpop.permute.xlu2 %689  ;;  %v774_v25 = vadd.f32 %v742_v23, %v640_v36  ;;  %v775_v38 = vadd.f32 %v743_v28, %v641_v4 }
 0x101   : > { %v810_v29 = vmax.f32 %v778_v5, 0.0  ;;  %v811_v49 = vmax.f32 %v779_v41, 0.0  ;;  %v391_v5 = vmul.f32 %v1757_v48, %v1728_v37  ;;  %v605_v41 = vmul.f32 %v1832_v43, %v552_v14 }
 0x102   : > { %v807_v0 = vmax.f32 %v775_v38, 0.0  ;;  %v502_v37 = vadd.f32 %v1863_v11, %v390_v46 }
 0x103   : > { %v846_v44 = vpack.c.bf16 %v812_v2, %v810_v29  ;;  %v847_v32 = vpack.c.bf16 %v813_v50, %v811_v49  ;;  %v556_v10 = vpop.permute.xlu0 %555  ;;  %v740_v49 = vmul.f32 %v1885_v3, %v690_v58  ;;  %v741_v50 = vmul.f32 %v1887_v30, %v690_v58 }
 0x104   : > { %v606_v22 = vmul.f32 %v1830_v39, %v556_v10  ;;  %v607_v9 = vmul.f32 %v1832_v43, %v556_v10  ;;  %v503_v48 = vadd.f32 %v1863_v11, %v391_v5  ;;  %v636_v4 = vadd.f32 %v604_v1, %v502_v37 }
 0x105   : > { %v564_v19 = vpop.permute.xlu1 %563  ;;  %995 = vmatpush.bf16.msra.mxu0 %v846_v44  ;;  %1309 = vmatpush.bf16.msra.mxu2 %v846_v44 }
 0x106   : > { %1044 = vmatpush.bf16.msra.mxu1 %v847_v32  ;;  %1317 = vmatpush.bf16.msra.mxu3 %v847_v32  ;;  %v610_v7 = vmul.f32 %v1830_v39, %v564_v19  ;;  %v611_v18 = vmul.f32 %v1832_v43, %v564_v19  ;;  %v638_v44 = vadd.f32 %v606_v22, %v1865_v12  ;;  %v806_v32 = vmax.f32 %v774_v25, 0.0 }
 0x107   : > { %v639_v19 = vadd.f32 %v607_v9, %v1867_v17  ;;  %v637_v13 = vadd.f32 %v605_v41, %v503_v48  ;;  %v736_v41 = vmul.f32 %v1885_v3, %v1905_v8 }
 0x108   : > { %v642_v60 = vadd.f32 %v610_v7, %v508_v20  ;;  %v643_v6 = vadd.f32 %v611_v18, %v509_v21  ;;  %v678_v45 = vpop.permute.xlu2 %677  ;;  %v772_v10 = vadd.f32 %v740_v49, %v638_v44  ;;  %v851_v49 = vld [vmem:[%s2177_s4 + $0x8] sm:$0xff] }
 0x109   : > { %v773_v17 = vadd.f32 %v741_v50, %v639_v19  ;;  %873 = vperm.xlu1 %1404, %v851_v49  }
 0x10a   : > { %v804_v22 = vmax.f32 %v772_v10, 0.0  ;;  %v853_v10 = vld [vmem:[%s2177_s4 + $0x18] sm:$0xff] }
 0x10b   : > { %v544_v7 = vpop.permute.xlu0 %543 }
 0x10c   : > { %v600_v11 = vmul.f32 %v1830_v39, %v544_v7  ;;  %v601_v28 = vmul.f32 %v1832_v43, %v544_v7 }
 0x10e   : > { %v698_v59 = vpop.permute.xlu1 %697 }
 0x10f   : > { %v744_v26 = vmul.f32 %v1885_v3, %v698_v59  ;;  %v745_v27 = vmul.f32 %v1887_v30, %v698_v59  ;;  %v805_v59 = vmax.f32 %v773_v17, 0.0 }
 0x111   : > { %v776_v29 = vadd.f32 %v744_v26, %v642_v60  ;;  %v777_v2 = vadd.f32 %v745_v27, %v643_v6  ;;  %v540_v20 = vpop.permute.xlu2 %539  ;;  %v734_v60 = vmul.f32 %v1885_v3, %v678_v45  ;;  %v735_v6 = vmul.f32 %v1887_v30, %v678_v45  ;;  %883 = vperm.xlu1 %1404, %v853_v10  }
 0x112   : > { %v632_v26 = vadd.f32 %v600_v11, %v1847_v56  ;;  %v633_v27 = vadd.f32 %v601_v28, %v1849_v57 }
 0x113   : > { %v808_v47 = vmax.f32 %v776_v29, 0.0  ;;  %v809_v34 = vmax.f32 %v777_v2, 0.0  ;;  %v737_v29 = vmul.f32 %v1887_v30, %v1905_v8 }
 0x114   : > { %v766_v57 = vadd.f32 %v734_v60, %v632_v26  ;;  %v767_v2 = vadd.f32 %v735_v6, %v633_v27 }
 0x115   : > { %v844_v14 = vpack.c.bf16 %v808_v47, %v806_v32  ;;  %v845_v36 = vpack.c.bf16 %v809_v34, %v807_v0 }
 0x116   : > { %v686_v24 = vpop.permute.xlu1 %685  ;;  %v798_v19 = vmax.f32 %v766_v57, 0.0  ;;  %v799_v0 = vmax.f32 %v767_v2, 0.0 }
 0x117   : > { %v738_v58 = vmul.f32 %v1885_v3, %v686_v24  ;;  %v739_v12 = vmul.f32 %v1887_v30, %v686_v24  ;;  %996 = vmatpush.bf16.msra.mxu0 %v844_v14  ;;  %1310 = vmatpush.bf16.msra.mxu2 %v844_v14  ;;  %v850_v24 = vld [vmem:[%s2177_s4] sm:$0xff] }
 0x118   : > { %1045 = vmatpush.bf16.msra.mxu1 %v845_v36  ;;  %1318 = vmatpush.bf16.msra.mxu3 %v845_v36 }
 0x119   : > { %v770_v18 = vadd.f32 %v738_v58, %v636_v4  ;;  %v771_v23 = vadd.f32 %v739_v12, %v637_v13  ;;  %868 = vperm.xlu0 %1403, %v850_v24   ;;  %v532_v12 = vpop.permute.xlu0 %531 }
 0x11a   : > { %v674_v32 = vpop.permute.xlu2 %673 }
 0x11b   : > { %v802_v21 = vmax.f32 %v770_v18, 0.0  ;;  %v803_v9 = vmax.f32 %v771_v23, 0.0  ;;  %v732_v14 = vmul.f32 %v1885_v3, %v674_v32  ;;  %v733_v36 = vmul.f32 %v1887_v30, %v674_v32 }
 0x11d   : > { %v842_v25 = vpack.c.bf16 %v804_v22, %v802_v21  ;;  %v843_v38 = vpack.c.bf16 %v805_v59, %v803_v9  ;;  %v594_v9 = vmul.f32 %v1830_v39, %v532_v12 }
 0x11f   : > { %v548_v46 = vpop.permute.xlu1 %547  ;;  %997 = vmatpush.bf16.msra.mxu0 %v842_v25  ;;  %1311 = vmatpush.bf16.msra.mxu2 %v842_v25  ;;  %v855_v25 = vld [vmem:[%s2177_s4 + $0x28] sm:$0xff] }
 0x120   : > { %v602_v5 = vmul.f32 %v1830_v39, %v548_v46  ;;  %v603_v1 = vmul.f32 %v1832_v43, %v548_v46  ;;  %1046 = vmatpush.bf16.msra.mxu1 %v843_v38  ;;  %1319 = vmatpush.bf16.msra.mxu3 %v843_v38  ;;  %v626_v46 = vadd.f32 %v594_v9, %v1821_v35  ;;  %v1305_v9 = vld [vmem:[%s2176_s3 + $0x30] sm:$0xff] }
 0x121   : > { %893 = vperm.xlu0 %1403, %v855_v25   ;;  %v591_v35 = vmul.f32 %v1832_v43, %v1914_v31 }
 0x122   : > { %v634_v45 = vadd.f32 %v602_v5, %v1792_v15  ;;  %v635_v56 = vadd.f32 %v603_v1, %v1794_v16  ;;  %v598_v15 = vmul.f32 %v1830_v39, %v540_v20  ;;  %v599_v16 = vmul.f32 %v1832_v43, %v540_v20  ;;  %v666_v17 = vpop.permute.xlu2 %665 }
 0x123   : > { %v729_v60 = vmul.f32 %v1887_v30, %v666_v17 }
 0x124   : > { %v768_v50 = vadd.f32 %v736_v41, %v634_v45  ;;  %v769_v44 = vadd.f32 %v737_v29, %v635_v56  ;;  %v630_v7 = vadd.f32 %v598_v15, %v1843_v51  ;;  %v631_v58 = vadd.f32 %v599_v16, %v1845_v52 }
 0x125   : > { %v595_v51 = vmul.f32 %v1832_v43, %v532_v12  ;;  %v852_v12 = vld [vmem:[%s2177_s4 + $0x10] sm:$0xff] }
 0x126   : > { %v800_v47 = vmax.f32 %v768_v50, 0.0  ;;  %v801_v34 = vmax.f32 %v769_v44, 0.0  ;;  %v764_v18 = vadd.f32 %v732_v14, %v630_v7  ;;  %v765_v23 = vadd.f32 %v733_v36, %v631_v58  ;;  %878 = vperm.xlu2 %1405, %v852_v12  }
 0x127   : > { %v536_v37 = vpop.permute.xlu1 %535  ;;  %v627_v5 = vadd.f32 %v595_v51, %v1823_v33  ;;  %v590_v50 = vmul.f32 %v1830_v39, %v1914_v31  ;;  %v863_v51 = vld [vmem:[%s2177_s4 + $0x68] sm:$0xff] }
 0x128   : > { %v840_v8 = vpack.c.bf16 %v800_v47, %v798_v19  ;;  %v841_v48 = vpack.c.bf16 %v801_v34, %v799_v0  ;;  %v596_v4 = vmul.f32 %v1830_v39, %v536_v37  ;;  %v597_v13 = vmul.f32 %v1832_v43, %v536_v37  ;;  %v858_v39 = vld [vmem:[%s2177_s4 + $0x40] sm:$0xff]  ;;  %v859_v43 = vld [vmem:[%s2177_s4 + $0x48] sm:$0xff] }
 0x129   : > { %v796_v38 = vmax.f32 %v764_v18, 0.0  ;;  %v797_v27 = vmax.f32 %v765_v23, 0.0  ;;  %v761_v56 = vadd.f32 %v729_v60, %v627_v5  ;;  %908 = vperm.xlu0 %1403, %v858_v39   ;;  %v864_v18 = vld [vmem:[%s2177_s4 + $0x70] sm:$0xff]  ;;  %v854_v23 = vld [vmem:[%s2177_s4 + $0x20] sm:$0xff] }
 0x12a   : > { %998 = vmatpush.bf16.msra.mxu0 %v840_v8  ;;  %1312 = vmatpush.bf16.msra.mxu2 %v840_v8  ;;  %v628_v28 = vadd.f32 %v596_v4, %v1779_v61  ;;  %v629_v20 = vadd.f32 %v597_v13, %v1781_v62  ;;  %v856_v61 = vld [vmem:[%s2177_s4 + $0x30] sm:$0xff]  ;;  %v728_v62 = vmul.f32 %v1885_v3, %v666_v17  ;;  %v658_v57 = vpop.permute.xlu2 %657  ;;  %v865_v17 = vld [vmem:[%s2177_s4 + $0x78] sm:$0xff] }
 0x12b   : > { %1047 = vmatpush.bf16.msra.mxu1 %v841_v48  ;;  %1320 = vmatpush.bf16.msra.mxu3 %v841_v48  ;;  %v724_v32 = vmul.f32 %v1885_v3, %v658_v57  ;;  %v725_v47 = vmul.f32 %v1887_v30, %v658_v57  ;;  %v793_v37 = vmax.f32 %v761_v56, 0.0 }
 0x12c   : > { %898 = vperm.xlu1 %1404, %v856_v61   ;;  %v760_v29 = vadd.f32 %v728_v62, %v626_v46 }
 0x12e   : > { %v792_v19 = vmax.f32 %v760_v29, 0.0  ;;  %888 = vperm.xlu2 %1405, %v854_v23  }
 0x130   : > { %v670_v11 = vpop.permute.xlu1 %669 }
 0x131   : > { %v730_v21 = vmul.f32 %v1885_v3, %v670_v11  ;;  %v731_v22 = vmul.f32 %v1887_v30, %v670_v11  ;;  %v1300_v11 = vld [vmem:[%s2176_s3 + $0x8] sm:$0xff] }
 0x133   : > { %v762_v52 = vadd.f32 %v730_v21, %v628_v28  ;;  %v763_v59 = vadd.f32 %v731_v22, %v629_v20  ;;  %v1304_v28 = vld [vmem:[%s2176_s3 + $0x28] sm:$0xff]  ;;  %v857_v20 = vld [vmem:[%s2177_s4 + $0x38] sm:$0xff]  ;;  %v860_v21 = vld [vmem:[%s2177_s4 + $0x50] sm:$0xff] }
 0x134   : > { %913 = vperm.xlu1 %1404, %v859_v43   ;;  %v1301_v22 = vld [vmem:[%s2176_s3 + $0x10] sm:$0xff] }
 0x135   : > { %v794_v6 = vmax.f32 %v762_v52, 0.0  ;;  %v795_v26 = vmax.f32 %v763_v59, 0.0  ;;  %v1302_v52 = vld [vmem:[%s2176_s3 + $0x18] sm:$0xff] }
 0x136   : > { %903 = vperm.xlu2 %1405, %v857_v20   ;;  %v1306_v59 = vld [vmem:[%s2176_s3 + $0x38] sm:$0xff] }
 0x137   : > { %v838_v1 = vpack.c.bf16 %v796_v38, %v794_v6  ;;  %v839_v41 = vpack.c.bf16 %v797_v27, %v795_v26 }
 0x138   : > { %v662_v45 = vpop.permute.xlu1 %661 }
 0x139   : > { %v726_v2 = vmul.f32 %v1885_v3, %v662_v45  ;;  %v727_v49 = vmul.f32 %v1887_v30, %v662_v45  ;;  %999 = vmatpush.bf16.msra.mxu0 %v838_v1  ;;  %1313 = vmatpush.bf16.msra.mxu2 %v838_v1 }
 0x13a   : > { %1048 = vmatpush.bf16.msra.mxu1 %v839_v41  ;;  %1321 = vmatpush.bf16.msra.mxu3 %v839_v41 }
 0x13b   : > { %v758_v33 = vadd.f32 %v726_v2, %v1889_v40  ;;  %v759_v44 = vadd.f32 %v727_v49, %v1891_v42  ;;  %v622_v40 = vadd.f32 %v590_v50, %v1766_v54  ;;  %v623_v42 = vadd.f32 %v591_v35, %v1768_v55  ;;  %v862_v55 = vld [vmem:[%s2177_s4 + $0x60] sm:$0xff] }
 0x13c   : > { %928 = vperm.xlu1 %1404, %v862_v55  }
 0x13d   : > { %v790_v0 = vmax.f32 %v758_v33, 0.0  ;;  %v791_v34 = vmax.f32 %v759_v44, 0.0  ;;  %v756_v48 = vadd.f32 %v724_v32, %v622_v40  ;;  %v757_v16 = vadd.f32 %v725_v47, %v623_v42 }
 0x13e   : > { %918 = vperm.xlu2 %1405, %v860_v21  }
 0x13f   : > { %v836_v31 = vpack.c.bf16 %v792_v19, %v790_v0  ;;  %v837_v8 = vpack.c.bf16 %v793_v37, %v791_v34  ;;  %v788_v24 = vmax.f32 %v756_v48, 0.0  ;;  %v789_v7 = vmax.f32 %v757_v16, 0.0 }
 0x140   : > { %v654_v15 = vpop.permute.xlu1 %653 }
 0x141   : > { %v722_v14 = vmul.f32 %v1885_v3, %v654_v15  ;;  %v723_v36 = vmul.f32 %v1887_v30, %v654_v15  ;;  %1000 = vmatpush.bf16.msra.mxu0 %v836_v31  ;;  %1314 = vmatpush.bf16.msra.mxu2 %v836_v31  ;;  %v1299_v30 = vld [vmem:[%s2176_s3] sm:$0xff] }
 0x142   : > { %1049 = vmatpush.bf16.msra.mxu1 %v837_v8  ;;  %1322 = vmatpush.bf16.msra.mxu3 %v837_v8 }
 0x143   : > { %v754_v4 = vadd.f32 %v722_v14, %v1853_v63  ;;  %v755_v54 = vadd.f32 %v723_v36, %v1855_v53  ;;  %v1303_v63 = vld [vmem:[%s2176_s3 + $0x20] sm:$0xff]  ;;  %v861_v53 = vld [vmem:[%s2177_s4 + $0x58] sm:$0xff] }
 0x144   : > { %923 = vperm.xlu0 %1403, %v861_v53   ;;  %943 = vperm.xlu1 %1404, %v865_v17  }
 0x145   : > { %v786_v13 = vmax.f32 %v754_v4, 0.0  ;;  %v787_v10 = vmax.f32 %v755_v54, 0.0 }
 0x146   : > { %933 = vperm.xlu2 %1405, %v863_v51  }
 0x147   : > { %v834_v3 = vpack.c.bf16 %v788_v24, %v786_v13  ;;  %v835_v58 = vpack.c.bf16 %v789_v7, %v787_v10 }
 0x149   : > { %1001 = vmatpush.bf16.msra.mxu0 %v834_v3  ;;  %1315 = vmatpush.bf16.msra.mxu2 %v834_v3 }
 0x14a   : > { %1050 = vmatpush.bf16.msra.mxu1 %v835_v58  ;;  %1323 = vmatpush.bf16.msra.mxu3 %v835_v58 }
 0x14c   : > { %1002 = vmatmul.bf16.vlgmr.msra.gmra.mxu0 %v1299_v30  ;;  %1022 = vmatmul.bf16.vlgmr.msra.gmra.mxu2 %v1303_v63 }
 0x14d   : > { %1051 = vmatmul.bf16.vlgmr.msra.gmra.mxu1 %v1299_v30  ;;  %1071 = vmatmul.bf16.vlgmr.msra.gmra.mxu3 %v1303_v63 }
 0x14e   : > { %938 = vperm.xlu0 %1403, %v864_v18  }
 0x15c   : > { %1007 = vmatmul.bf16.gmra.mxu0 %v1300_v11  ;;  %1027 = vmatmul.bf16.gmra.mxu2 %v1304_v28 }
 0x15d   : > { %1056 = vmatmul.bf16.gmra.mxu1 %v1300_v11  ;;  %1076 = vmatmul.bf16.gmra.mxu3 %v1304_v28 }
 0x16c   : > { %1012 = vmatmul.bf16.gmra.mxu0 %v1301_v22  ;;  %1032 = vmatmul.bf16.gmra.mxu2 %v1305_v9 }
 0x16d   : > { %1061 = vmatmul.bf16.gmra.mxu1 %v1301_v22  ;;  %1081 = vmatmul.bf16.gmra.mxu3 %v1305_v9 }
 0x17b   : > { %v874_v25 = vpop.permute.xlu1 %873 }
 0x17c   : > { %1017 = vmatmul.bf16.gmra.mxu0 %v1302_v52  ;;  %1037 = vmatmul.bf16.gmra.mxu2 %v1306_v59 }
 0x17d   : > { %1066 = vmatmul.bf16.gmra.mxu1 %v1302_v52  ;;  %1086 = vmatmul.bf16.gmra.mxu3 %v1306_v59 }
 0x180   : > { %v879_v62 = vpop.permute.xlu2 %878 }
 0x183   : > { %v884_v38 = vpop.permute.xlu1 %883 }
 0x188   : > { %v2086_v26 = vpop.permute.xlu2 %888 }
 0x18b   : > { %v869_v61 = vpop.permute.xlu0 %868 }
 0x190   : > { %v2094_v47 = vpop.permute.xlu2 %903 }
 0x193   : > { %v2081_v60 = vpop.permute.xlu0 %893 }
 0x198   : > { %v919_v54 = vpop.permute.xlu2 %918 }
 0x19b   : > { %v909_v45 = vpop.permute.xlu0 %908 }
 0x19e   : > { %v2088_v41 = vpop.permute.xlu1 %898 }
 0x1a6   : > { %v914_v37 = vpop.permute.xlu1 %913 }
 0x1b6   : > { %v924_v18 = vpop.permute.xlu0 %923 }
 0x1c9   : > { %v1003_v6 = vpop.f32.mrf.mxu0 }
 0x1ca   : > { %v1004_v27 = vadd.f32 %v1003_v6, %v869_v61  ;;  %v1052_v46 = vpop.f32.mrf.mxu1 }
 0x1cb   : > { %v1053_v5 = vadd.f32 %v1052_v46, %v869_v61 }
 0x1cc   : > { %v1092_v1 = vmax.f32 %v1004_v27, 0.0 }
 0x1cd   : > { %v1093_v29 = vmax.f32 %v1053_v5, 0.0 }
 0x1ce   : > { %1124 = vst [vmem:[%s2090_s29] sm:$0xff] %v1092_v1 }
 0x1cf   : > { %1125 = vst [vmem:[%s2090_s29 + $0x8] sm:$0xff] %v1093_v29  ;;  %v1023_v56 = vpop.f32.mrf.mxu2 }
 0x1d0   : > { %v1024_v57 = vadd.f32 %v1023_v56, %v909_v45  ;;  %v1072_v2 = vpop.f32.mrf.mxu3 }
 0x1d1   : > { %v1073_v49 = vadd.f32 %v1072_v2, %v909_v45  ;;  %v1005_v50 = vpop.f32.mrf.mxu0 }
 0x1d2   : > { %v1108_v35 = vmax.f32 %v1024_v57, 0.0  ;;  %v1006_v33 = vadd.f32 %v1005_v50, %v874_v25  ;;  %v1054_v44 = vpop.f32.mrf.mxu1 }
 0x1d3   : > { %v1109_v32 = vmax.f32 %v1073_v49, 0.0  ;;  %v1055_v19 = vadd.f32 %v1054_v44, %v874_v25  ;;  %v934_v49 = vpop.permute.xlu2 %933 }
 0x1d4   : > { %1140 = vst [vmem:[%s2090_s29 + $0x80] sm:$0xff] %v1108_v35  ;;  %v1094_v0 = vmax.f32 %v1006_v33, 0.0 }
 0x1d5   : > { %1141 = vst [vmem:[%s2090_s29 + $0x88] sm:$0xff] %v1109_v32  ;;  %v1095_v34 = vmax.f32 %v1055_v19, 0.0 }
 0x1d6   : > { %1126 = vst [vmem:[%s2090_s29 + $0x10] sm:$0xff] %v1094_v0 }
 0x1d7   : > { %1127 = vst [vmem:[%s2090_s29 + $0x18] sm:$0xff] %v1095_v34  ;;  %v1025_v39 = vpop.f32.mrf.mxu2 }
 0x1d8   : > { %v1026_v43 = vadd.f32 %v1025_v39, %v914_v37  ;;  %v1074_v40 = vpop.f32.mrf.mxu3 }
 0x1d9   : > { %v1075_v42 = vadd.f32 %v1074_v40, %v914_v37  ;;  %v1008_v31 = vpop.f32.mrf.mxu0  ;;  %v939_v40 = vpop.permute.xlu0 %938 }
 0x1da   : > { %v1110_v8 = vmax.f32 %v1026_v43, 0.0  ;;  %v1009_v48 = vadd.f32 %v1008_v31, %v879_v62  ;;  %v1057_v15 = vpop.f32.mrf.mxu1 }
 0x1db   : > { %v1111_v16 = vmax.f32 %v1075_v42, 0.0  ;;  %v1058_v14 = vadd.f32 %v1057_v15, %v879_v62  ;;  %v929_v62 = vpop.permute.xlu1 %928 }
 0x1dc   : > { %1142 = vst [vmem:[%s2090_s29 + $0x90] sm:$0xff] %v1110_v8  ;;  %v1096_v36 = vmax.f32 %v1009_v48, 0.0 }
 0x1dd   : > { %1143 = vst [vmem:[%s2090_s29 + $0x98] sm:$0xff] %v1111_v16  ;;  %v1097_v4 = vmax.f32 %v1058_v14, 0.0 }
 0x1de   : > { %1128 = vst [vmem:[%s2090_s29 + $0x20] sm:$0xff] %v1096_v36 }
 0x1df   : > { %1129 = vst [vmem:[%s2090_s29 + $0x28] sm:$0xff] %v1097_v4  ;;  %v1028_v55 = vpop.f32.mrf.mxu2 }
 0x1e0   : > { %v1029_v13 = vadd.f32 %v1028_v55, %v919_v54  ;;  %v1077_v24 = vpop.f32.mrf.mxu3 }
 0x1e1   : > { %v1078_v10 = vadd.f32 %v1077_v24, %v919_v54  ;;  %v1010_v7 = vpop.f32.mrf.mxu0 }
 0x1e2   : > { %v1112_v3 = vmax.f32 %v1029_v13, 0.0  ;;  %v1011_v58 = vadd.f32 %v1010_v7, %v884_v38  ;;  %v1059_v30 = vpop.f32.mrf.mxu1 }
 0x1e3   : > { %v1113_v63 = vmax.f32 %v1078_v10, 0.0  ;;  %v1060_v53 = vadd.f32 %v1059_v30, %v884_v38  ;;  %v944_v13 = vpop.permute.xlu1 %943 }
 0x1e4   : > { %1144 = vst [vmem:[%s2090_s29 + $0xa0] sm:$0xff] %v1112_v3  ;;  %v1098_v12 = vmax.f32 %v1011_v58, 0.0 }
 0x1e5   : > { %1145 = vst [vmem:[%s2090_s29 + $0xa8] sm:$0xff] %v1113_v63  ;;  %v1099_v17 = vmax.f32 %v1060_v53, 0.0 }
 0x1e6   : > { %1130 = vst [vmem:[%s2090_s29 + $0x30] sm:$0xff] %v1098_v12 }
 0x1e7   : > { %1131 = vst [vmem:[%s2090_s29 + $0x38] sm:$0xff] %v1099_v17  ;;  %v1030_v23 = vpop.f32.mrf.mxu2 }
 0x1e8   : > { %v1031_v11 = vadd.f32 %v1030_v23, %v924_v18  ;;  %v1079_v28 = vpop.f32.mrf.mxu3 }
 0x1e9   : > { %v1080_v20 = vadd.f32 %v1079_v28, %v924_v18  ;;  %v1013_v21 = vpop.f32.mrf.mxu0 }
 0x1ea   : > { %v1114_v22 = vmax.f32 %v1031_v11, 0.0  ;;  %v1014_v9 = vadd.f32 %v1013_v21, %v2086_v26  ;;  %v1062_v51 = vpop.f32.mrf.mxu1 }
 0x1eb   : > { %v1115_v52 = vmax.f32 %v1080_v20, 0.0  ;;  %v1063_v59 = vadd.f32 %v1062_v51, %v2086_v26 }
 0x1ec   : > { %1146 = vst [vmem:[%s2090_s29 + $0xb0] sm:$0xff] %v1114_v22  ;;  %v1100_v25 = vmax.f32 %v1014_v9, 0.0 }
 0x1ed   : > { %1147 = vst [vmem:[%s2090_s29 + $0xb8] sm:$0xff] %v1115_v52  ;;  %v1101_v61 = vmax.f32 %v1063_v59, 0.0 }
 0x1ee   : > { %1132 = vst [vmem:[%s2090_s29 + $0x40] sm:$0xff] %v1100_v25 }
 0x1ef   : > { %1133 = vst [vmem:[%s2090_s29 + $0x48] sm:$0xff] %v1101_v61  ;;  %v1033_v38 = vpop.f32.mrf.mxu2 }
 0x1f0   : > { %v1034_v6 = vadd.f32 %v1033_v38, %v929_v62  ;;  %v1082_v27 = vpop.f32.mrf.mxu3 }
 0x1f1   : > { %v1083_v46 = vadd.f32 %v1082_v27, %v929_v62  ;;  %v1015_v5 = vpop.f32.mrf.mxu0 }
 0x1f2   : > { %v1116_v1 = vmax.f32 %v1034_v6, 0.0  ;;  %v1016_v29 = vadd.f32 %v1015_v5, %v2081_v60  ;;  %v1064_v26 = vpop.f32.mrf.mxu1 }
 0x1f3   : > { %v1117_v45 = vmax.f32 %v1083_v46, 0.0  ;;  %v1065_v56 = vadd.f32 %v1064_v26, %v2081_v60 }
 0x1f4   : > { %1148 = vst [vmem:[%s2090_s29 + $0xc0] sm:$0xff] %v1116_v1  ;;  %v1102_v57 = vmax.f32 %v1016_v29, 0.0 }
 0x1f5   : > { %1149 = vst [vmem:[%s2090_s29 + $0xc8] sm:$0xff] %v1117_v45  ;;  %v1103_v2 = vmax.f32 %v1065_v56, 0.0 }
 0x1f6   : > { %1134 = vst [vmem:[%s2090_s29 + $0x50] sm:$0xff] %v1102_v57 }
 0x1f7   : > { %1135 = vst [vmem:[%s2090_s29 + $0x58] sm:$0xff] %v1103_v2  ;;  %v1035_v50 = vpop.f32.mrf.mxu2 }
 0x1f8   : > { %v1036_v35 = vadd.f32 %v1035_v50, %v934_v49  ;;  %v1084_v33 = vpop.f32.mrf.mxu3 }
 0x1f9   : > { %v1085_v44 = vadd.f32 %v1084_v33, %v934_v49  ;;  %v1018_v32 = vpop.f32.mrf.mxu0 }
 0x1fa   : > { %v1118_v19 = vmax.f32 %v1036_v35, 0.0  ;;  %v1019_v0 = vadd.f32 %v1018_v32, %v2088_v41  ;;  %v1067_v60 = vpop.f32.mrf.mxu1 }
 0x1fb   : > { %v1119_v34 = vmax.f32 %v1085_v44, 0.0  ;;  %v1068_v37 = vadd.f32 %v1067_v60, %v2088_v41 }
 0x1fc   : > { %1150 = vst [vmem:[%s2090_s29 + $0xd0] sm:$0xff] %v1118_v19  ;;  %v1104_v39 = vmax.f32 %v1019_v0, 0.0 }
 0x1fd   : > { %1151 = vst [vmem:[%s2090_s29 + $0xd8] sm:$0xff] %v1119_v34  ;;  %v1105_v43 = vmax.f32 %v1068_v37, 0.0 }
 0x1fe   : > { %1136 = vst [vmem:[%s2090_s29 + $0x60] sm:$0xff] %v1104_v39 }
 0x1ff   : > { %1137 = vst [vmem:[%s2090_s29 + $0x68] sm:$0xff] %v1105_v43  ;;  %v1038_v42 = vpop.f32.mrf.mxu2 }
 0x200   : > { %v1039_v31 = vadd.f32 %v1038_v42, %v939_v40  ;;  %v1087_v8 = vpop.f32.mrf.mxu3 }
 0x201   : > { %v1088_v48 = vadd.f32 %v1087_v8, %v939_v40  ;;  %v1020_v15 = vpop.f32.mrf.mxu0 }
 0x202   : > { %v1120_v16 = vmax.f32 %v1039_v31, 0.0  ;;  %v1021_v41 = vadd.f32 %v1020_v15, %v2094_v47  ;;  %v1069_v14 = vpop.f32.mrf.mxu1 }
 0x203   : > { %v1121_v36 = vmax.f32 %v1088_v48, 0.0  ;;  %v1070_v4 = vadd.f32 %v1069_v14, %v2094_v47 }
 0x204   : > { %1152 = vst [vmem:[%s2090_s29 + $0xe0] sm:$0xff] %v1120_v16  ;;  %v1106_v54 = vmax.f32 %v1021_v41, 0.0 }
 0x205   : > { %1153 = vst [vmem:[%s2090_s29 + $0xe8] sm:$0xff] %v1121_v36  ;;  %v1107_v55 = vmax.f32 %v1070_v4, 0.0 }
 0x206   : > { %1138 = vst [vmem:[%s2090_s29 + $0x70] sm:$0xff] %v1106_v54 }
 0x207   : > { %1139 = vst [vmem:[%s2090_s29 + $0x78] sm:$0xff] %v1107_v55  ;;  %v1040_v24 = vpop.f32.mrf.mxu2 }
 0x208   : > { %v1041_v10 = vadd.f32 %v1040_v24, %v944_v13  ;;  %v1089_v47 = vpop.f32.mrf.mxu3 }
 0x209   : > { %v1090_v7 = vadd.f32 %v1089_v47, %v944_v13 }
 0x20a   : > { %v1122_v3 = vmax.f32 %v1041_v10, 0.0 }
 0x20b   : > { %v1123_v58 = vmax.f32 %v1090_v7, 0.0 }
 0x20c   : > { %1154 = vst [vmem:[%s2090_s29 + $0xf0] sm:$0xff] %v1122_v3 }
 0x20d   : > { %1155 = vst [vmem:[%s2090_s29 + $0xf8] sm:$0xff] %v1123_v58 }
 0x20e   : > { %1433 = shalt.err (!%p1430_p5)
}
 0x20f   : > { %s1489_s25 = smov 256   ;;  %s1490_s29 = smov 16  }
 0x210   : > { %1324 = dma.vmem_to_hbm [thread:$0]  (%p1561_p4), %s1172_s21, 4096, %s1174_s11, %s1157_s12, %s1489_s25, %s1489_s25, %s1490_s29  }
 0x211 PF: > { %p1330_p6 = scmp.ge.s32.totalorder %s1484_s23, 2  ;;  %s1188_s7 = sand.u32 1, %s1464_s18  }
 0x212   : > { %s1189_s8 = scalar_lea.sflag [#allocation3], %s1188_s7 }
 0x213   : > { %p1327_p7 = pnand %p1330_p6, %p1568_p8 }
 0x215   : > { %p1328_p9 = pneg %p1327_p7 }
 0x217   : > { %1459 = dma.done.wait (%p1328_p9), %s1189_s8, 4096  }
 0x218   : > { %1461 = vsyncadd (%p1328_p9), %s1189_s8, 4294963200  ;;  %s18_s23 = sadd.s32 1, %s1484_s23   ;;  %s2181_s18 = smov %s1468_s19 }
 0x219   : > { %p15_p10 = scmp.ge.s32.totalorder %s18_s23, 4   ;;  %s2182_s19 = smov %s1472_s20 }
 0x21a   : > { %s2183_s20 = smov %s1574_s6  ;;  %s2184_s21 = smov %s1480_s22 }
 0x21b   : > { %s2185_s22 = smov %s2187_s26  ;;  %17 = sbr.rel (!%p15_p10) target bundleno = 4 (0x4), region = 75 }
 0x220   :  { %1195 = vsyncpa [#allocation3], 1 }
 0x221   :  { %1197 = vsyncpa [#allocation3 + $0x1], 1 }

</bundles_post_ra>
